<compile_context>
chip_gen: v7x
topology: tpu7x:2x2x1
jax: 0.10.0
libtpu: 0.0.40
codegen_flags: <defaults>
</compile_context>

<pallas_src>
import functools

import jax
import jax.numpy as jnp
from jax.experimental import pallas as pl
from jax.experimental.pallas import tpu as pltpu


def _round_up(x, m):
    return (x + m - 1) // m * m


def _choose_batch_tile(B, block_batch):
    """Lane-aligned batch tile; keep >= 2 grid steps when the batch allows it."""
    B128 = _round_up(B, 128)
    TB = min(_round_up(block_batch, 128), B128)
    if B128 >= 256 and B128 <= TB:
        # split into ~2 equal lane-aligned tiles so v7x's two TCs both get work
        TB = ((B128 // 128 + 1) // 2) * 128
    Bp = _round_up(B128, TB)
    return TB, Bp


# ----------------------------- Pallas kernel --------------------------------
def _res_assembling_kernel(
    t_ref, i_ref, trep_ref,            # [1, TB] rows (batch on lanes)
    bwt_ref, bwi_ref, bb_in_ref,       # boundary-in:  [Hb,1], [Hb,1], [Hb,1]
    bw_hid_ref, bb_hid_ref,            # boundary-hid: [Lb+1,Hb,Hb] (W^T), [Lb+1,Hb,1]
    wls_ref, cls_ref, bls_ref,         # folded heads: [2,Hb], [2,1], [2,1]
    aw_in_ref, ab_in_ref,              # assembler-in: [Ha,1], [Ha,1]
    aw_hid_ref, ab_hid_ref,            # assembler-hid: [La,Ha,Ha] (W^T), [La,Ha,1]
    aw_out_ref,                        # assembler-out weight row: [1, Ha]
    ab_out_ref,                        # assembler-out bias (SMEM, shape (1,))
    out_ref,                           # [1, TB]  (batch on lanes)
    *, n_layers_boundary, n_layers_assembler,
):
    t_row = t_ref[...]                 # [1, TB]
    i_row = i_ref[...]                 # [1, TB]
    trep_row = trep_ref[...]           # [1, TB]

    # ---- boundary network ----
    # input layer Linear(2, Hb): two VPU rank-1 broadcasts (K=2 is not MXU work)
    h = jnp.tanh(bwt_ref[...] * t_row + bwi_ref[...] * i_row + bb_in_ref[...])   # [Hb, TB]
    for l in range(n_layers_boundary):
        h = jnp.tanh(
            jnp.dot(bw_hid_ref[l], h, preferred_element_type=jnp.float32)
            + bb_hid_ref[l]
        )
    # trailing Linear (no activation) inside boundaryNetwork_hid
    h = (
        jnp.dot(bw_hid_ref[n_layers_boundary], h, preferred_element_type=jnp.float32)
        + bb_hid_ref[n_layers_boundary]
    )

    # ---- folded boundaryNetwork_out + local_solutions heads ----
    # pre[k, :] = (ls_wb[k] @ bw_out^T) @ h + ls_wt[k] * t_rep + (ls_wb[k] @ bb_out^T + ls_b[k])
    pre = (
        jnp.dot(wls_ref[...], h, preferred_element_type=jnp.float32)             # [2, TB]
        + cls_ref[...] * trep_row
        + bls_ref[...]
    )
    ls = jnp.tanh(pre)                                                           # [2, TB]
    out = jnp.where(
        i_row == 1.0, ls[1:2, :],
        jnp.where(i_row == 0.0, ls[0:1, :], jnp.zeros_like(t_row)),
    )                                                                            # [1, TB]

    # ---- assembler network ----
    a = aw_in_ref[...] * out + ab_in_ref[...]                                    # [Ha, TB]
    for l in range(n_layers_assembler):
        a = jnp.tanh(
            jnp.dot(aw_hid_ref[l], a, preferred_element_type=jnp.float32)
            + ab_hid_ref[l]
        )
    # Linear(Ha, 1): [1, Ha] @ [Ha, TB] -> lane-dense [1, TB]
    res = jnp.dot(aw_out_ref[...], a, preferred_element_type=jnp.float32)
    out_ref[...] = res + ab_out_ref[0]


# ------------------------------- wrapper -------------------------------------
def res_assembling_forward(params, t, t_representant, i,
                           *, n_layers_boundary, n_layers_assembler,
                           block_batch=2048):
    B = t.shape[0]
    Hb = params["bw_in"].shape[1]
    Ha = params["aw_in"].shape[1]
    n_branch = params["bw_out"].shape[1]
    Lb, La = n_layers_boundary, n_layers_assembler
    hi = jax.lax.Precision.HIGHEST
    f32 = jnp.float32

    # ---- fold boundaryNetwork_out + local-solution heads (tiny, done once) ----
    ls_wb = params["ls_wb"].reshape(2, n_branch)                                  # [2, nb]
    wls_t = jnp.dot(ls_wb, params["bw_out"].T, precision=hi).astype(f32)          # [2, Hb]
    bls_col = (jnp.dot(ls_wb, params["bb_out"].reshape(n_branch, 1), precision=hi)
               + params["ls_b"].reshape(2, 1)).astype(f32)                        # [2, 1]
    cls_col = params["ls_wt"].reshape(2, 1).astype(f32)                           # [2, 1]

    # ---- pre-transpose weights/biases to the batch-on-lanes convention ----
    bwt_col = params["bw_in"][0].reshape(Hb, 1)                                   # t column
    bwi_col = params["bw_in"][1].reshape(Hb, 1)                                   # i column
    bb_in_col = params["bb_in"].reshape(Hb, 1)
    bw_hid_t = jnp.swapaxes(params["bw_hid"], 1, 2)                               # [Lb+1,Hb,Hb]
    bb_hid_col = jnp.swapaxes(params["bb_hid"], 1, 2)                             # [Lb+1,Hb,1]
    aw_in_col = params["aw_in"].reshape(Ha, 1)
    ab_in_col = params["ab_in"].reshape(Ha, 1)
    aw_hid_t = jnp.swapaxes(params["aw_hid"], 1, 2)                               # [La,Ha,Ha]
    ab_hid_col = jnp.swapaxes(params["ab_hid"], 1, 2)                             # [La,Ha,1]
    aw_out_row = params["aw_out"]                                                 # [1, Ha]
    ab_out_scalar = params["ab_out"].reshape(1).astype(f32)

    # ---- batch tiling (lane-dense rows; >= 2 grid steps when possible) ----
    TB, Bp = _choose_batch_tile(B, block_batch)
    pad = Bp - B

    def as_row(v):
        r = v.reshape(1, B).astype(f32)
        return jnp.pad(r, ((0, 0), (0, pad))) if pad else r

    t_row = as_row(t)
    i_row = as_row(i)
    trep_row = as_row(t_representant)
    grid = (Bp // TB,)

    kernel = functools.partial(
        _res_assembling_kernel,
        n_layers_boundary=Lb,
        n_layers_assembler=La,
    )

    full2 = lambda b: (0, 0)
    full3 = lambda b: (0, 0, 0)
    in_specs = [
        pl.BlockSpec((1, TB), lambda b: (0, b)),         # t row (tiled over batch)
        pl.BlockSpec((1, TB), lambda b: (0, b)),         # i row
        pl.BlockSpec((1, TB), lambda b: (0, b)),         # t_representant row
        pl.BlockSpec((Hb, 1), full2),                    # boundary-in weight col (t)
        pl.BlockSpec((Hb, 1), full2),                    # boundary-in weight col (i)
        pl.BlockSpec((Hb, 1), full2),                    # boundary-in bias col
        pl.BlockSpec((Lb + 1, Hb, Hb), full3),           # boundary hidden weights (W^T, resident)
        pl.BlockSpec((Lb + 1, Hb, 1), full3),            # boundary hidden bias cols
        pl.BlockSpec((2, Hb), full2),                    # folded boundary_out x local heads
        pl.BlockSpec((2, 1), full2),                     # folded t_rep coefficients
        pl.BlockSpec((2, 1), full2),                     # folded bias
        pl.BlockSpec((Ha, 1), full2),                    # assembler-in weight col
        pl.BlockSpec((Ha, 1), full2),                    # assembler-in bias col
        pl.BlockSpec((La, Ha, Ha), full3),               # assembler hidden weights (W^T, resident)
        pl.BlockSpec((La, Ha, 1), full3),                # assembler hidden bias cols
        pl.BlockSpec((1, Ha), full2),                    # assembler-out weight row
        pl.BlockSpec(memory_space=pltpu.MemorySpace.SMEM),  # assembler-out bias scalar
    ]
    out_specs = pl.BlockSpec((1, TB), lambda b: (0, b))  # lane-dense [1, Bp] output

    out_row = pl.pallas_call(
        kernel,
        out_shape=jax.ShapeDtypeStruct((1, Bp), jnp.float32),
        grid=grid,
        in_specs=in_specs,
        out_specs=out_specs,
        compiler_params=pltpu.CompilerParams(
            dimension_semantics=("parallel",),           # shards batch across TCs on v7x
        ),
    )(
        t_row, i_row, trep_row,
        bwt_col, bwi_col, bb_in_col,
        bw_hid_t, bb_hid_col,
        wls_t, cls_col, bls_col,
        aw_in_col, ab_in_col,
        aw_hid_t, ab_hid_col,
        aw_out_row, ab_out_scalar,
    )
    return out_row.reshape(Bp, 1)[:B]


# ---------------------- deterministic parameter setup ------------------------
def make_params(key, n_branch, n_hidden_assembler, n_layers_assembler,
                n_hidden_boundary, n_layers_boundary):
    ks = jax.random.split(key, 20)
    u = lambda k, shape, fan_in: jax.random.uniform(
        k, shape, jnp.float32, -1.0 / jnp.sqrt(fan_in), 1.0 / jnp.sqrt(fan_in)
    )
    Hb, Ha = n_hidden_boundary, n_hidden_assembler
    return {
        # boundaryNetwork_in: Linear(2, Hb)
        "bw_in": u(ks[0], (2, Hb), 2.0),
        "bb_in": u(ks[1], (1, Hb), 2.0),
        # boundaryNetwork_hid: (n_layers_boundary Linear+tanh) + final Linear
        "bw_hid": u(ks[2], (n_layers_boundary + 1, Hb, Hb), float(Hb)),
        "bb_hid": u(ks[3], (n_layers_boundary + 1, 1, Hb), float(Hb)),
        # boundaryNetwork_out: Linear(Hb, n_branch)
        "bw_out": u(ks[4], (Hb, n_branch), float(Hb)),
        "bb_out": u(ks[5], (1, n_branch), float(Hb)),
        # synthetic local_solutions[k](t_rep, boundary) = tanh(t_rep*wt + boundary@wb + b)
        "ls_wt": u(ks[6], (2, 1, 1), 1.0),
        "ls_wb": u(ks[7], (2, 1, n_branch), float(n_branch)),
        "ls_b": u(ks[8], (2, 1, 1), 1.0),
        # assemblerNetwork_in: Linear(1, Ha)
        "aw_in": u(ks[9], (1, Ha), 1.0),
        "ab_in": u(ks[10], (1, Ha), 1.0),
        # assemblerNetwork_hid_list: n_layers_assembler Linear(Ha, Ha)
        "aw_hid": u(ks[11], (n_layers_assembler, Ha, Ha), float(Ha)),
        "ab_hid": u(ks[12], (n_layers_assembler, 1, Ha), float(Ha)),
        # assemblerNetwork_out: Linear(Ha, 1)
        "aw_out": u(ks[13], (1, Ha), float(Ha)),
        "ab_out": u(ks[14], (1, 1), float(Ha)),
    }


# ------------------------- pure-JAX reference (check) -------------------------
def reference_forward(p, t, trep, i, *, n_layers_boundary, n_layers_assembler):
    with jax.default_matmul_precision("highest"):
        x = jnp.concatenate([t, i], axis=1)
        h = jnp.tanh(x @ p["bw_in"] + p["bb_in"])
        for l in range(n_layers_boundary):
            h = jnp.tanh(h @ p["bw_hid"][l] + p["bb_hid"][l])
        h = h @ p["bw_hid"][n_layers_boundary] + p["bb_hid"][n_layers_boundary]
        boundary = h @ p["bw_out"] + p["bb_out"]
        m0 = (i == 0.0).astype(jnp.float32)
        m1 = (i == 1.0).astype(jnp.float32)
        ls = lambda k: jnp.tanh(
            trep * p["ls_wt"][k]
            + jnp.sum(boundary * p["ls_wb"][k], axis=1, keepdims=True)
            + p["ls_b"][k]
        )
        out = ls(0) * m0 + ls(1) * m1
        a = out @ p["aw_in"].reshape(1, -1) + p["ab_in"]
        for l in range(n_layers_assembler):
            a = jnp.tanh(a @ p["aw_hid"][l] + p["ab_hid"][l])
        return jnp.sum(a * p["aw_out"], axis=1, keepdims=True) + p["ab_out"]


if __name__ == "__main__":
    # small, module-consistent sizes
    n_branch_local_input = 4
    n_hidden_assembler = 32
    n_layers_assembler = 2
    n_hidden_boundary = 32
    n_layers_boundary = 2

    key = jax.random.PRNGKey(0)
    kp, kd = jax.random.split(key)
    params = make_params(kp, n_branch_local_input, n_hidden_assembler,
                         n_layers_assembler, n_hidden_boundary, n_layers_boundary)

    def run_case(B, block_batch, seed_key):
        kt, ktr, ki = jax.random.split(seed_key, 3)
        t = jax.random.uniform(kt, (B, 1), jnp.float32)
        t_representant = jax.random.uniform(ktr, (B, 1), jnp.float32)
        i = jax.random.bernoulli(ki, 0.5, (B, 1)).astype(jnp.float32)  # values in {0, 1}

        out = res_assembling_forward(
            params, t, t_representant, i,
            n_layers_boundary=n_layers_boundary,
            n_layers_assembler=n_layers_assembler,
            block_batch=block_batch,
        )
        out = jax.block_until_ready(out)
        ref = reference_forward(
            params, t, t_representant, i,
            n_layers_boundary=n_layers_boundary,
            n_layers_assembler=n_layers_assembler,
        )
        assert out.shape == (B, 1)
        # in-kernel dots use Mosaic's default f32 path; reference is HIGHEST
        assert jnp.allclose(out, ref, atol=5e-4, rtol=5e-4)

    k1, k2 = jax.random.split(kd)
    run_case(B=8, block_batch=2048, seed_key=k1)     # single 128-lane tile
    run_case(B=600, block_batch=2048, seed_key=k2)   # 2-step grid (v7x split) + batch padding
    print("KERNEL_OK")
</pallas_src>

<mosaic_0001>
module attributes {stable_mosaic.version = 11 : i64} {
  func.func @_res_assembling_kernel(%arg0: i32, %arg1: memref<1x128xf32, #tpu.memory_space<vmem>>, %arg2: memref<1x128xf32, #tpu.memory_space<vmem>>, %arg3: memref<1x128xf32, #tpu.memory_space<vmem>>, %arg4: memref<32x1xf32, #tpu.memory_space<vmem>>, %arg5: memref<32x1xf32, #tpu.memory_space<vmem>>, %arg6: memref<32x1xf32, #tpu.memory_space<vmem>>, %arg7: memref<3x32x32xf32, #tpu.memory_space<vmem>>, %arg8: memref<3x32x1xf32, #tpu.memory_space<vmem>>, %arg9: memref<2x32xf32, #tpu.memory_space<vmem>>, %arg10: memref<2x1xf32, #tpu.memory_space<vmem>>, %arg11: memref<2x1xf32, #tpu.memory_space<vmem>>, %arg12: memref<32x1xf32, #tpu.memory_space<vmem>>, %arg13: memref<32x1xf32, #tpu.memory_space<vmem>>, %arg14: memref<2x32x32xf32, #tpu.memory_space<vmem>>, %arg15: memref<2x32x1xf32, #tpu.memory_space<vmem>>, %arg16: memref<1x32xf32, #tpu.memory_space<vmem>>, %arg17: memref<1xf32, #tpu.memory_space<smem>>, %arg18: memref<1x128xf32, #tpu.memory_space<vmem>>) attributes {dimension_semantics = [#tpu.dimension_semantics<parallel>], iteration_bounds = array<i64: 1>, scalar_prefetch = 0 : i64, scratch_operands = 0 : i64, tpu.core_type = #tpu.core_type<tc>, window_params = [{transform_indices = @transform_0, window_bounds = array<i64: 1, 128>}, {transform_indices = @transform_1, window_bounds = array<i64: 1, 128>}, {transform_indices = @transform_2, window_bounds = array<i64: 1, 128>}, {pipeline_mode = #tpu.pipeline_mode<synchronous>, transform_indices = @transform_3, window_bounds = array<i64: 32, 1>}, {pipeline_mode = #tpu.pipeline_mode<synchronous>, transform_indices = @transform_4, window_bounds = array<i64: 32, 1>}, {pipeline_mode = #tpu.pipeline_mode<synchronous>, transform_indices = @transform_5, window_bounds = array<i64: 32, 1>}, {pipeline_mode = #tpu.pipeline_mode<synchronous>, transform_indices = @transform_6, window_bounds = array<i64: 3, 32, 32>}, {pipeline_mode = #tpu.pipeline_mode<synchronous>, transform_indices = @transform_7, window_bounds = array<i64: 3, 32, 1>}, {pipeline_mode = #tpu.pipeline_mode<synchronous>, transform_indices = @transform_8, window_bounds = array<i64: 2, 32>}, {pipeline_mode = #tpu.pipeline_mode<synchronous>, transform_indices = @transform_9, window_bounds = array<i64: 2, 1>}, {pipeline_mode = #tpu.pipeline_mode<synchronous>, transform_indices = @transform_10, window_bounds = array<i64: 2, 1>}, {pipeline_mode = #tpu.pipeline_mode<synchronous>, transform_indices = @transform_11, window_bounds = array<i64: 32, 1>}, {pipeline_mode = #tpu.pipeline_mode<synchronous>, transform_indices = @transform_12, window_bounds = array<i64: 32, 1>}, {pipeline_mode = #tpu.pipeline_mode<synchronous>, transform_indices = @transform_13, window_bounds = array<i64: 2, 32, 32>}, {pipeline_mode = #tpu.pipeline_mode<synchronous>, transform_indices = @transform_14, window_bounds = array<i64: 2, 32, 1>}, {pipeline_mode = #tpu.pipeline_mode<synchronous>, transform_indices = @transform_15, window_bounds = array<i64: 1, 32>}, {transform_indices = @transform_16, window_bounds = array<i64: 1>}, {transform_indices = @transform_17, window_bounds = array<i64: 1, 128>}]} {
    %c0 = arith.constant 0 : index
    %c0_0 = arith.constant 0 : index
    %0 = vector.load %arg1[%c0, %c0_0] : memref<1x128xf32, #tpu.memory_space<vmem>>, vector<1x128xf32>
    %c0_1 = arith.constant 0 : index
    %c0_2 = arith.constant 0 : index
    %1 = vector.load %arg2[%c0_1, %c0_2] : memref<1x128xf32, #tpu.memory_space<vmem>>, vector<1x128xf32>
    %c0_3 = arith.constant 0 : index
    %c0_4 = arith.constant 0 : index
    %2 = vector.load %arg3[%c0_3, %c0_4] : memref<1x128xf32, #tpu.memory_space<vmem>>, vector<1x128xf32>
    %c0_5 = arith.constant 0 : index
    %c0_6 = arith.constant 0 : index
    %3 = vector.load %arg4[%c0_5, %c0_6] : memref<32x1xf32, #tpu.memory_space<vmem>>, vector<32x1xf32>
    %4 = vector.broadcast %3 : vector<32x1xf32> to vector<32x128xf32>
    %5 = vector.broadcast %0 : vector<1x128xf32> to vector<32x128xf32>
    %6 = arith.mulf %4, %5 : vector<32x128xf32>
    %c0_7 = arith.constant 0 : index
    %c0_8 = arith.constant 0 : index
    %7 = vector.load %arg5[%c0_7, %c0_8] : memref<32x1xf32, #tpu.memory_space<vmem>>, vector<32x1xf32>
    %8 = vector.broadcast %7 : vector<32x1xf32> to vector<32x128xf32>
    %9 = vector.broadcast %1 : vector<1x128xf32> to vector<32x128xf32>
    %10 = arith.mulf %8, %9 : vector<32x128xf32>
    %11 = arith.addf %6, %10 : vector<32x128xf32>
    %c0_9 = arith.constant 0 : index
    %c0_10 = arith.constant 0 : index
    %12 = vector.load %arg6[%c0_9, %c0_10] : memref<32x1xf32, #tpu.memory_space<vmem>>, vector<32x1xf32>
    %13 = vector.broadcast %12 : vector<32x1xf32> to vector<32x128xf32>
    %14 = arith.addf %11, %13 : vector<32x128xf32>
    %15 = math.tanh %14 : vector<32x128xf32>
    %c0_11 = arith.constant 0 : index
    %c0_12 = arith.constant 0 : index
    %c0_13 = arith.constant 0 : index
    %16 = vector.load %arg7[%c0_11, %c0_12, %c0_13] : memref<3x32x32xf32, #tpu.memory_space<vmem>>, vector<1x32x32xf32>
    %17 = vector.shape_cast %16 : vector<1x32x32xf32> to vector<32x32xf32>
    %cst = arith.constant dense<0.000000e+00> : vector<32x128xf32>
    %18 = tpu.matmul %17, %15, %cst {dimension_numbers = #tpu.dot_dimension_numbers<[1], [0], [0], [1], [0, 0, 1, 1], [], []>} : vector<32x32xf32>, vector<32x128xf32>, vector<32x128xf32> -> vector<32x128xf32>
    %c0_14 = arith.constant 0 : index
    %c0_15 = arith.constant 0 : index
    %c0_16 = arith.constant 0 : index
    %19 = vector.load %arg8[%c0_14, %c0_15, %c0_16] : memref<3x32x1xf32, #tpu.memory_space<vmem>>, vector<1x32x1xf32>
    %20 = vector.shape_cast %19 : vector<1x32x1xf32> to vector<32x1xf32>
    %21 = vector.broadcast %20 : vector<32x1xf32> to vector<32x128xf32>
    %22 = arith.addf %18, %21 : vector<32x128xf32>
    %23 = math.tanh %22 : vector<32x128xf32>
    %c1 = arith.constant 1 : index
    %c0_17 = arith.constant 0 : index
    %c0_18 = arith.constant 0 : index
    %24 = vector.load %arg7[%c1, %c0_17, %c0_18] : memref<3x32x32xf32, #tpu.memory_space<vmem>>, vector<1x32x32xf32>
    %25 = vector.shape_cast %24 : vector<1x32x32xf32> to vector<32x32xf32>
    %cst_19 = arith.constant dense<0.000000e+00> : vector<32x128xf32>
    %26 = tpu.matmul %25, %23, %cst_19 {dimension_numbers = #tpu.dot_dimension_numbers<[1], [0], [0], [1], [0, 0, 1, 1], [], []>} : vector<32x32xf32>, vector<32x128xf32>, vector<32x128xf32> -> vector<32x128xf32>
    %c1_20 = arith.constant 1 : index
    %c0_21 = arith.constant 0 : index
    %c0_22 = arith.constant 0 : index
    %27 = vector.load %arg8[%c1_20, %c0_21, %c0_22] : memref<3x32x1xf32, #tpu.memory_space<vmem>>, vector<1x32x1xf32>
    %28 = vector.shape_cast %27 : vector<1x32x1xf32> to vector<32x1xf32>
    %29 = vector.broadcast %28 : vector<32x1xf32> to vector<32x128xf32>
    %30 = arith.addf %26, %29 : vector<32x128xf32>
    %31 = math.tanh %30 : vector<32x128xf32>
    %c2 = arith.constant 2 : index
    %c0_23 = arith.constant 0 : index
    %c0_24 = arith.constant 0 : index
    %32 = vector.load %arg7[%c2, %c0_23, %c0_24] : memref<3x32x32xf32, #tpu.memory_space<vmem>>, vector<1x32x32xf32>
    %33 = vector.shape_cast %32 : vector<1x32x32xf32> to vector<32x32xf32>
    %cst_25 = arith.constant dense<0.000000e+00> : vector<32x128xf32>
    %34 = tpu.matmul %33, %31, %cst_25 {dimension_numbers = #tpu.dot_dimension_numbers<[1], [0], [0], [1], [0, 0, 1, 1], [], []>} : vector<32x32xf32>, vector<32x128xf32>, vector<32x128xf32> -> vector<32x128xf32>
    %c2_26 = arith.constant 2 : index
    %c0_27 = arith.constant 0 : index
    %c0_28 = arith.constant 0 : index
    %35 = vector.load %arg8[%c2_26, %c0_27, %c0_28] : memref<3x32x1xf32, #tpu.memory_space<vmem>>, vector<1x32x1xf32>
    %36 = vector.shape_cast %35 : vector<1x32x1xf32> to vector<32x1xf32>
    %37 = vector.broadcast %36 : vector<32x1xf32> to vector<32x128xf32>
    %38 = arith.addf %34, %37 : vector<32x128xf32>
    %c0_29 = arith.constant 0 : index
    %c0_30 = arith.constant 0 : index
    %39 = vector.load %arg9[%c0_29, %c0_30] : memref<2x32xf32, #tpu.memory_space<vmem>>, vector<2x32xf32>
    %cst_31 = arith.constant dense<0.000000e+00> : vector<2x128xf32>
    %40 = tpu.matmul %39, %38, %cst_31 {dimension_numbers = #tpu.dot_dimension_numbers<[1], [0], [0], [1], [0, 0, 1, 1], [], []>} : vector<2x32xf32>, vector<32x128xf32>, vector<2x128xf32> -> vector<2x128xf32>
    %c0_32 = arith.constant 0 : index
    %c0_33 = arith.constant 0 : index
    %41 = vector.load %arg10[%c0_32, %c0_33] : memref<2x1xf32, #tpu.memory_space<vmem>>, vector<2x1xf32>
    %42 = vector.broadcast %41 : vector<2x1xf32> to vector<2x128xf32>
    %43 = vector.broadcast %2 : vector<1x128xf32> to vector<2x128xf32>
    %44 = arith.mulf %42, %43 : vector<2x128xf32>
    %45 = arith.addf %40, %44 : vector<2x128xf32>
    %c0_34 = arith.constant 0 : index
    %c0_35 = arith.constant 0 : index
    %46 = vector.load %arg11[%c0_34, %c0_35] : memref<2x1xf32, #tpu.memory_space<vmem>>, vector<2x1xf32>
    %47 = vector.broadcast %46 : vector<2x1xf32> to vector<2x128xf32>
    %48 = arith.addf %45, %47 : vector<2x128xf32>
    %49 = math.tanh %48 : vector<2x128xf32>
    %cst_36 = arith.constant 1.000000e+00 : f32
    %50 = vector.broadcast %cst_36 : f32 to vector<1x128xf32>
    %51 = arith.cmpf oeq, %1, %50 : vector<1x128xf32>
    %52 = vector.extract_strided_slice %49 {offsets = [1, 0], sizes = [1, 128], strides = [1, 1]} : vector<2x128xf32> to vector<1x128xf32>
    %cst_37 = arith.constant 0.000000e+00 : f32
    %53 = vector.broadcast %cst_37 : f32 to vector<1x128xf32>
    %54 = arith.cmpf oeq, %1, %53 : vector<1x128xf32>
    %55 = vector.extract_strided_slice %49 {offsets = [0, 0], sizes = [1, 128], strides = [1, 1]} : vector<2x128xf32> to vector<1x128xf32>
    %cst_38 = arith.constant 0.000000e+00 : f32
    %56 = vector.broadcast %cst_38 : f32 to vector<1x128xf32>
    %57 = arith.select %54, %55, %56 : vector<1x128xi1>, vector<1x128xf32>
    %58 = arith.select %51, %52, %57 : vector<1x128xi1>, vector<1x128xf32>
    %c0_39 = arith.constant 0 : index
    %c0_40 = arith.constant 0 : index
    %59 = vector.load %arg12[%c0_39, %c0_40] : memref<32x1xf32, #tpu.memory_space<vmem>>, vector<32x1xf32>
    %60 = vector.broadcast %59 : vector<32x1xf32> to vector<32x128xf32>
    %61 = vector.broadcast %58 : vector<1x128xf32> to vector<32x128xf32>
    %62 = arith.mulf %60, %61 : vector<32x128xf32>
    %c0_41 = arith.constant 0 : index
    %c0_42 = arith.constant 0 : index
    %63 = vector.load %arg13[%c0_41, %c0_42] : memref<32x1xf32, #tpu.memory_space<vmem>>, vector<32x1xf32>
    %64 = vector.broadcast %63 : vector<32x1xf32> to vector<32x128xf32>
    %65 = arith.addf %62, %64 : vector<32x128xf32>
    %c0_43 = arith.constant 0 : index
    %c0_44 = arith.constant 0 : index
    %c0_45 = arith.constant 0 : index
    %66 = vector.load %arg14[%c0_43, %c0_44, %c0_45] : memref<2x32x32xf32, #tpu.memory_space<vmem>>, vector<1x32x32xf32>
    %67 = vector.shape_cast %66 : vector<1x32x32xf32> to vector<32x32xf32>
    %cst_46 = arith.constant dense<0.000000e+00> : vector<32x128xf32>
    %68 = tpu.matmul %67, %65, %cst_46 {dimension_numbers = #tpu.dot_dimension_numbers<[1], [0], [0], [1], [0, 0, 1, 1], [], []>} : vector<32x32xf32>, vector<32x128xf32>, vector<32x128xf32> -> vector<32x128xf32>
    %c0_47 = arith.constant 0 : index
    %c0_48 = arith.constant 0 : index
    %c0_49 = arith.constant 0 : index
    %69 = vector.load %arg15[%c0_47, %c0_48, %c0_49] : memref<2x32x1xf32, #tpu.memory_space<vmem>>, vector<1x32x1xf32>
    %70 = vector.shape_cast %69 : vector<1x32x1xf32> to vector<32x1xf32>
    %71 = vector.broadcast %70 : vector<32x1xf32> to vector<32x128xf32>
    %72 = arith.addf %68, %71 : vector<32x128xf32>
    %73 = math.tanh %72 : vector<32x128xf32>
    %c1_50 = arith.constant 1 : index
    %c0_51 = arith.constant 0 : index
    %c0_52 = arith.constant 0 : index
    %74 = vector.load %arg14[%c1_50, %c0_51, %c0_52] : memref<2x32x32xf32, #tpu.memory_space<vmem>>, vector<1x32x32xf32>
    %75 = vector.shape_cast %74 : vector<1x32x32xf32> to vector<32x32xf32>
    %cst_53 = arith.constant dense<0.000000e+00> : vector<32x128xf32>
    %76 = tpu.matmul %75, %73, %cst_53 {dimension_numbers = #tpu.dot_dimension_numbers<[1], [0], [0], [1], [0, 0, 1, 1], [], []>} : vector<32x32xf32>, vector<32x128xf32>, vector<32x128xf32> -> vector<32x128xf32>
    %c1_54 = arith.constant 1 : index
    %c0_55 = arith.constant 0 : index
    %c0_56 = arith.constant 0 : index
    %77 = vector.load %arg15[%c1_54, %c0_55, %c0_56] : memref<2x32x1xf32, #tpu.memory_space<vmem>>, vector<1x32x1xf32>
    %78 = vector.shape_cast %77 : vector<1x32x1xf32> to vector<32x1xf32>
    %79 = vector.broadcast %78 : vector<32x1xf32> to vector<32x128xf32>
    %80 = arith.addf %76, %79 : vector<32x128xf32>
    %81 = math.tanh %80 : vector<32x128xf32>
    %c0_57 = arith.constant 0 : index
    %c0_58 = arith.constant 0 : index
    %82 = vector.load %arg16[%c0_57, %c0_58] : memref<1x32xf32, #tpu.memory_space<vmem>>, vector<1x32xf32>
    %cst_59 = arith.constant dense<0.000000e+00> : vector<1x128xf32>
    %83 = tpu.matmul %82, %81, %cst_59 {dimension_numbers = #tpu.dot_dimension_numbers<[1], [0], [0], [1], [0, 0, 1, 1], [], []>} : vector<1x32xf32>, vector<32x128xf32>, vector<1x128xf32> -> vector<1x128xf32>
    %c0_60 = arith.constant 0 : index
    %84 = memref.load %arg17[%c0_60] : memref<1xf32, #tpu.memory_space<smem>>
    %85 = vector.broadcast %84 : f32 to vector<1x128xf32>
    %86 = arith.addf %83, %85 : vector<1x128xf32>
    %c0_61 = arith.constant 0 : index
    %c0_62 = arith.constant 0 : index
    %87 = vector.load %arg18[%c0_61, %c0_62] : memref<1x128xf32, #tpu.memory_space<vmem>>, vector<1x128xf32>
    tpu.vector_store %arg18[%c0_61, %c0_62], %86 {strides = array<i32>} : memref<1x128xf32, #tpu.memory_space<vmem>>, vector<1x128xf32>,
    return
  }
  func.func @transform_0(%arg0: i32) -> (i32, i32) {
    %c0_i32 = arith.constant 0 : i32
    %c0_i32_0 = arith.constant 0 : i32
    return %c0_i32, %arg0 : i32, i32
  }
  func.func @transform_1(%arg0: i32) -> (i32, i32) {
    %c0_i32 = arith.constant 0 : i32
    %c0_i32_0 = arith.constant 0 : i32
    return %c0_i32, %arg0 : i32, i32
  }
  func.func @transform_2(%arg0: i32) -> (i32, i32) {
    %c0_i32 = arith.constant 0 : i32
    %c0_i32_0 = arith.constant 0 : i32
    return %c0_i32, %arg0 : i32, i32
  }
  func.func @transform_3(%arg0: i32) -> (i32, i32) {
    %c0_i32 = arith.constant 0 : i32
    %c0_i32_0 = arith.constant 0 : i32
    %c0_i32_1 = arith.constant 0 : i32
    return %c0_i32, %c0_i32_0 : i32, i32
  }
  func.func @transform_4(%arg0: i32) -> (i32, i32) {
    %c0_i32 = arith.constant 0 : i32
    %c0_i32_0 = arith.constant 0 : i32
    %c0_i32_1 = arith.constant 0 : i32
    return %c0_i32, %c0_i32_0 : i32, i32
  }
  func.func @transform_5(%arg0: i32) -> (i32, i32) {
    %c0_i32 = arith.constant 0 : i32
    %c0_i32_0 = arith.constant 0 : i32
    %c0_i32_1 = arith.constant 0 : i32
    return %c0_i32, %c0_i32_0 : i32, i32
  }
  func.func @transform_6(%arg0: i32) -> (i32, i32, i32) {
    %c0_i32 = arith.constant 0 : i32
    %c0_i32_0 = arith.constant 0 : i32
    %c0_i32_1 = arith.constant 0 : i32
    %c0_i32_2 = arith.constant 0 : i32
    return %c0_i32, %c0_i32_0, %c0_i32_1 : i32, i32, i32
  }
  func.func @transform_7(%arg0: i32) -> (i32, i32, i32) {
    %c0_i32 = arith.constant 0 : i32
    %c0_i32_0 = arith.constant 0 : i32
    %c0_i32_1 = arith.constant 0 : i32
    %c0_i32_2 = arith.constant 0 : i32
    return %c0_i32, %c0_i32_0, %c0_i32_1 : i32, i32, i32
  }
  func.func @transform_8(%arg0: i32) -> (i32, i32) {
    %c0_i32 = arith.constant 0 : i32
    %c0_i32_0 = arith.constant 0 : i32
    %c0_i32_1 = arith.constant 0 : i32
    return %c0_i32, %c0_i32_0 : i32, i32
  }
  func.func @transform_9(%arg0: i32) -> (i32, i32) {
    %c0_i32 = arith.constant 0 : i32
    %c0_i32_0 = arith.constant 0 : i32
    %c0_i32_1 = arith.constant 0 : i32
    return %c0_i32, %c0_i32_0 : i32, i32
  }
  func.func @transform_10(%arg0: i32) -> (i32, i32) {
    %c0_i32 = arith.constant 0 : i32
    %c0_i32_0 = arith.constant 0 : i32
    %c0_i32_1 = arith.constant 0 : i32
    return %c0_i32, %c0_i32_0 : i32, i32
  }
  func.func @transform_11(%arg0: i32) -> (i32, i32) {
    %c0_i32 = arith.constant 0 : i32
    %c0_i32_0 = arith.constant 0 : i32
    %c0_i32_1 = arith.constant 0 : i32
    return %c0_i32, %c0_i32_0 : i32, i32
  }
  func.func @transform_12(%arg0: i32) -> (i32, i32) {
    %c0_i32 = arith.constant 0 : i32
    %c0_i32_0 = arith.constant 0 : i32
    %c0_i32_1 = arith.constant 0 : i32
    return %c0_i32, %c0_i32_0 : i32, i32
  }
  func.func @transform_13(%arg0: i32) -> (i32, i32, i32) {
    %c0_i32 = arith.constant 0 : i32
    %c0_i32_0 = arith.constant 0 : i32
    %c0_i32_1 = arith.constant 0 : i32
    %c0_i32_2 = arith.constant 0 : i32
    return %c0_i32, %c0_i32_0, %c0_i32_1 : i32, i32, i32
  }
  func.func @transform_14(%arg0: i32) -> (i32, i32, i32) {
    %c0_i32 = arith.constant 0 : i32
    %c0_i32_0 = arith.constant 0 : i32
    %c0_i32_1 = arith.constant 0 : i32
    %c0_i32_2 = arith.constant 0 : i32
    return %c0_i32, %c0_i32_0, %c0_i32_1 : i32, i32, i32
  }
  func.func @transform_15(%arg0: i32) -> (i32, i32) {
    %c0_i32 = arith.constant 0 : i32
    %c0_i32_0 = arith.constant 0 : i32
    %c0_i32_1 = arith.constant 0 : i32
    return %c0_i32, %c0_i32_0 : i32, i32
  }
  func.func @transform_16(%arg0: i32) -> i32 {
    %c0_i32 = arith.constant 0 : i32
    %c0_i32_0 = arith.constant 0 : i32
    return %c0_i32 : i32
  }
  func.func @transform_17(%arg0: i32) -> (i32, i32) {
    %c0_i32 = arith.constant 0 : i32
    %c0_i32_0 = arith.constant 0 : i32
    return %c0_i32, %arg0 : i32, i32
  }
}

</mosaic_0001>

<bundles_post_ra>
// kernel: tpu_custom_call.1
= control target key start
LH: loop header
LB: loop body
LE: loop exit
PB: predicated region body
PF: predicated region fallthrough
CT: control target
= control target key end

     0   :  { %s1753_s0 = inlined_call_operand.vmem [shape: f32[1,128], index: 0, kind: input, shape index: {}]   ;;  %s1754_s1 = inlined_call_operand.vmem [shape: f32[1,128], index: 1, kind: input, shape index: {}]   ;;  %s1755_s2 = inlined_call_operand.vmem [shape: f32[1,128], index: 2, kind: input, shape index: {}]   ;;  %s1756_s3 = inlined_call_operand.vmem [shape: f32[32,1], index: 3, kind: input, shape index: {}]   ;;  %s1757_s4 = inlined_call_operand.vmem [shape: f32[32,1], index: 4, kind: input, shape index: {}]   ;;  %s1758_s5 = inlined_call_operand.vmem [shape: f32[32,1], index: 5, kind: input, shape index: {}]   ;;  %s1759_s6 = inlined_call_operand.vmem [shape: f32[3,32,32], index: 6, kind: input, shape index: {}]   ;;  %s1760_s7 = inlined_call_operand.vmem [shape: f32[3,32,1], index: 7, kind: input, shape index: {}]   ;;  %s1761_s8 = inlined_call_operand.vmem [shape: f32[2,32], index: 8, kind: input, shape index: {}]   ;;  %s1762_s9 = inlined_call_operand.vmem [shape: f32[2,1], index: 9, kind: input, shape index: {}]   ;;  %s1763_s10 = inlined_call_operand.vmem [shape: f32[2,1], index: 10, kind: input, shape index: {}]   ;;  %s1764_s11 = inlined_call_operand.vmem [shape: f32[32,1], index: 11, kind: input, shape index: {}]   ;;  %s1765_s12 = inlined_call_operand.vmem [shape: f32[32,1], index: 12, kind: input, shape index: {}]   ;;  %s1766_s13 = inlined_call_operand.vmem [shape: f32[2,32,32], index: 13, kind: input, shape index: {}]   ;;  %s1767_s14 = inlined_call_operand.vmem [shape: f32[2,32,1], index: 14, kind: input, shape index: {}]   ;;  %s1768_s15 = inlined_call_operand.vmem [shape: f32[1,32], index: 15, kind: input, shape index: {}]   ;;  %s1769_s16 = inlined_call_operand.<no memory space> [shape: f32[1], index: 16, kind: input, shape index: {}]   ;;  %s1770_s17 = inlined_call_operand.hbm [shape: f32[1,128], index: 17, kind: output, shape index: {}]  }
   0x1   :  { %1771 = sst [smem:[#allocation6_spill]] %s1753_s0 }
   0x2   :  { %1772 = sst [smem:[#allocation7_spill]] %s1754_s1 }
   0x3   :  { %v95_v0 = vld [vmem:[%s1757_s4] sm:$0xff]  ;;  %v1398_v2 = vmov 0   ;;  %v96_v3 = vld [vmem:[%s1757_s4 + $0x8] sm:$0xff]  ;;  %v64_v5 = vld [vmem:[%s1756_s3 + $0x18] sm:$0xff] }
   0x4   :  { %v61_v1 = vld [vmem:[%s1756_s3] sm:$0xff]  ;;  %1331 = vset.pattern.permute.xlu1 %v1398_v2  ;;  %1330 = vset.pattern.permute.xlu0 %v1398_v2  ;;  %v62_v4 = vld [vmem:[%s1756_s3 + $0x8] sm:$0xff]  ;;  %v63_v6 = vld [vmem:[%s1756_s3 + $0x10] sm:$0xff] }
   0x5   :  { %101 = vperm.xlu1 %1331, %v95_v0   ;;  %67 = vperm.xlu0 %1330, %v61_v1   ;;  %v98_v7 = vld [vmem:[%s1757_s4 + $0x18] sm:$0xff]  ;;  %v97_v8 = vld [vmem:[%s1757_s4 + $0x10] sm:$0xff] }
   0x9   :  { %106 = vperm.xlu1 %1331, %v96_v3   ;;  %72 = vperm.xlu0 %1330, %v62_v4  }
   0xd   :  { %82 = vperm.xlu1 %1331, %v64_v5   ;;  %77 = vperm.xlu0 %1330, %v63_v6  }
  0x11   :  { %116 = vperm.xlu1 %1331, %v98_v7   ;;  %111 = vperm.xlu0 %1330, %v97_v8  }
  0x12   :  { %23 = vsyncpa [#allocation4], 0  ;;  %v134_v9 = vld [vmem:[%s1758_s5 + $0x8] sm:$0xff]  ;;  %v133_v10 = vld [vmem:[%s1758_s5] sm:$0xff]  ;;  %vm193_vm0 = vcmask 261120   ;;  %v120_v44 = vlaneseq  ;;  %s1773_s19 = sld [smem:[#allocation7_spill]] }
  0x13   :  { %v136_v11 = vld [vmem:[%s1758_s5 + $0x18] sm:$0xff]  ;;  %v135_v12 = vld [vmem:[%s1758_s5 + $0x10] sm:$0xff]  ;;  %v170_v13 = vld [vmem:[%s1760_s7 + $0x8] sm:$0xff]  ;;  %s1774_s20 = sld [smem:[#allocation6_spill]]  ;;  %vm1400_vm1 = vmmov 0   ;;  %s1403_s4 = smov [#allocation3]  }
  0x14   :  { %v169_v14 = vld [vmem:[%s1760_s7] sm:$0xff]  ;;  %v172_v15 = vld [vmem:[%s1760_s7 + $0x18] sm:$0xff]  ;;  %v171_v16 = vld [vmem:[%s1760_s7 + $0x10] sm:$0xff]  ;;  %v1624_v45 = vshrl.u32 %v120_v44, 7  ;;  %s1074_s18 = sshll.u32 %s1403_s4, 4  ;;  %s1075_s18 = int_to_ptr.vmem [resolvable:$true] %s1074_s18 }
  0x15   :  { %144 = vperm.xlu1 %1331, %v134_v9   ;;  %139 = vperm.xlu0 %1330, %v133_v10   ;;  %v1092_v17 = vld [vmem:[%s1760_s7 + $0x28] sm:$0xff]  ;;  %v1091_v18 = vld [vmem:[%s1760_s7 + $0x20] sm:$0xff]  ;;  %v1094_v19 = vld [vmem:[%s1760_s7 + $0x38] sm:$0xff]  ;;  %p1379_p1 = scmp.lt.s32.totalorder %s1075_s18, %s1075_s18 }
  0x16   :  { %v1093_v20 = vld [vmem:[%s1760_s7 + $0x30] sm:$0xff]  ;;  %v1104_v21 = vld [vmem:[%s1760_s7 + $0x48] sm:$0xff]  ;;  %v1103_v22 = vld [vmem:[%s1760_s7 + $0x40] sm:$0xff]  ;;  %v122_v48 = vsub.s32 0, %v1624_v45 }
  0x17   :  { %v165_v23 = vld [vmem:[%s1759_s6] sm:$0xff]  ;;  %v1106_v24 = vld [vmem:[%s1760_s7 + $0x58] sm:$0xff]  ;;  %v1105_v25 = vld [vmem:[%s1760_s7 + $0x50] sm:$0xff] }
  0x18   :  { %1188 = vmatprep.mubr.msk.f32.mxu0 %vm193_vm0, %v165_v23  ;;  %v640_v26 = vld [vmem:[%s1763_s10] sm:$0x3]  ;;  %v670_v28 = vld [vmem:[%s1764_s11 + $0x8] sm:$0xff]  ;;  %v672_v32 = vld [vmem:[%s1764_s11 + $0x18] sm:$0xff] }
  0x19   :  { %154 = vperm.xlu1 %1331, %v136_v11   ;;  %149 = vperm.xlu0 %1330, %v135_v12   ;;  %v554_v27 = vld [vmem:[%s1762_s9] sm:$0x3]  ;;  %v704_v30 = vld [vmem:[%s1765_s12 + $0x8] sm:$0xff]  ;;  %v671_v33 = vld [vmem:[%s1764_s11 + $0x10] sm:$0xff] }
  0x1a   :  { %v669_v29 = vld [vmem:[%s1764_s11] sm:$0xff]  ;;  %v706_v34 = vld [vmem:[%s1765_s12 + $0x18] sm:$0xff]  ;;  %v705_v35 = vld [vmem:[%s1765_s12 + $0x10] sm:$0xff] }
  0x1b   :  { %v703_v31 = vld [vmem:[%s1765_s12] sm:$0xff]  ;;  %v736_v36 = vld [vmem:[%s1767_s14 + $0x8] sm:$0xff]  ;;  %v738_v38 = vld [vmem:[%s1767_s14 + $0x18] sm:$0xff] }
  0x1c   :  { %v735_v37 = vld [vmem:[%s1767_s14] sm:$0xff]  ;;  %v737_v39 = vld [vmem:[%s1767_s14 + $0x10] sm:$0xff]  ;;  %v1122_v40 = vld [vmem:[%s1767_s14 + $0x28] sm:$0xff] }
  0x1d   :  { %180 = vperm.xlu1 %1331, %v170_v13   ;;  %175 = vperm.xlu0 %1330, %v169_v14   ;;  %v1121_v41 = vld [vmem:[%s1767_s14 + $0x20] sm:$0xff]  ;;  %v1124_v42 = vld [vmem:[%s1767_s14 + $0x38] sm:$0xff]  ;;  %v1123_v43 = vld [vmem:[%s1767_s14 + $0x30] sm:$0xff]  ;;  %s1378_s14 = scalar_lea.vmem %s1075_s18, 32 }
  0x1e   :  { %v1630_v49 = vld [vmem:[%s1773_s19] sm:$0x1]  ;;  %v1090_v44 = vld [vmem:[%s1759_s6 + $0x38] sm:$0xff]  ;;  %s1374_s19 = scalar_lea.vmem %s1075_s18, 16 }
  0x1f   :  { %v123_v52 = vrot.slane %v1630_v49, %v122_v48  ;;  %v1082_v53 = vld [vmem:[%s1774_s20] ss:$0 sm:$0xff]  ;;  %vm649_vm2 = vcmp.eq.f32.partialorder %v1630_v49, 0.0  ;;  %vm648_vm3 = vcmp.eq.f32.partialorder %v1630_v49, 1.0  ;;  %p1375_p0 = scmp.ne.s32.totalorder %s1075_s18, %s1374_s19  ;;  %p1380_p2 = scmp.lt.s32.totalorder %s1378_s14, %s1374_s19 }
  0x20   :  { %v1087_v23 = vld [vmem:[%s1759_s6 + $0x20] sm:$0xff] }
  0x21   :  { %190 = vperm.xlu1 %1331, %v172_v15   ;;  %185 = vperm.xlu0 %1330, %v171_v16   ;;  %p1381_p3 = por %p1380_p2, %p1379_p1 }
  0x22   :  { %1202 = vmatprep.mubr.msk.f32.mxu1 %vm193_vm0, %v1087_v23  ;;  %v731_v23 = vld [vmem:[%s1766_s13] sm:$0xff] }
  0x23   :  { %p1382_p4 = pnand %p1381_p3, %p1375_p0 }
  0x25   :  { %312 = vperm.xlu1 %1331, %v1092_v17   ;;  %307 = vperm.xlu0 %1330, %v1091_v18  }
  0x29   :  { %322 = vperm.xlu1 %1331, %v1094_v19   ;;  %317 = vperm.xlu0 %1330, %v1093_v20   ;;  %v166_v20 = vld [vmem:[%s1759_s6 + $0x8] sm:$0xff] }
  0x2d   :  { %443 = vperm.xlu1 %1331, %v1104_v21   ;;  %438 = vperm.xlu0 %1330, %v1103_v22   ;;  %v167_v21 = vld [vmem:[%s1759_s6 + $0x10] sm:$0xff]  ;;  %v168_v22 = vld [vmem:[%s1759_s6 + $0x18] sm:$0xff] }
  0x31   :  { %453 = vperm.xlu1 %1331, %v1106_v24   ;;  %448 = vperm.xlu0 %1330, %v1105_v25  }
  0x35   :  { %643 = vperm.xlu1 %1331, %v640_v26   ;;  %557 = vperm.xlu0 %1330, %v554_v27  }
  0x39   :  { %680 = vperm.xlu1 %1331, %v670_v28   ;;  %675 = vperm.xlu0 %1330, %v669_v29  }
  0x3d   :  { %714 = vperm.xlu1 %1331, %v704_v30   ;;  %709 = vperm.xlu0 %1330, %v703_v31  }
  0x41   :  { %690 = vperm.xlu1 %1331, %v672_v32   ;;  %685 = vperm.xlu0 %1330, %v671_v33  }
  0x45   :  { %724 = vperm.xlu1 %1331, %v706_v34   ;;  %719 = vperm.xlu0 %1330, %v705_v35  }
  0x49   :  { %746 = vperm.xlu1 %1331, %v736_v36   ;;  %741 = vperm.xlu0 %1330, %v735_v37  }
  0x4d   :  { %756 = vperm.xlu1 %1331, %v738_v38   ;;  %751 = vperm.xlu0 %1330, %v737_v39  }
  0x51   :  { %877 = vperm.xlu1 %1331, %v1122_v40   ;;  %872 = vperm.xlu0 %1330, %v1121_v41  }
  0x55   :  { %887 = vperm.xlu1 %1331, %v1124_v42   ;;  %882 = vperm.xlu0 %1330, %v1123_v43   ;;  %v1088_v42 = vld [vmem:[%s1759_s6 + $0x28] sm:$0xff]  ;;  %v1089_v43 = vld [vmem:[%s1759_s6 + $0x30] sm:$0xff] }
  0x84   :  { %v102_v46 = vpop.permute.xlu1 %101  ;;  %v68_v47 = vpop.permute.xlu0 %67 }
  0x85   :  { %v125_v56 = vmul.f32 %v123_v52, %v102_v46  ;;  %v91_v57 = vmul.f32 %v1082_v53, %v68_v47  ;;  %v1099_v46 = vld [vmem:[%s1759_s6 + $0x40] sm:$0xff] }
  0x87   :  { %v129_v1 = vadd.f32 %v125_v56, %v91_v57 }
  0x88   :  { %v107_v50 = vpop.permute.xlu1 %106  ;;  %v73_v51 = vpop.permute.xlu0 %72 }
  0x89   :  { %v126_v58 = vmul.f32 %v123_v52, %v107_v50  ;;  %v92_v59 = vmul.f32 %v1082_v53, %v73_v51 }
  0x8b   :  { %v130_v0 = vadd.f32 %v126_v58, %v92_v59 }
  0x8c   :  { %v83_v54 = vpop.permute.xlu1 %82  ;;  %v78_v55 = vpop.permute.xlu0 %77 }
  0x8d   :  { %v94_v4 = vmul.f32 %v1082_v53, %v83_v54  ;;  %v93_v5 = vmul.f32 %v1082_v53, %v78_v55 }
  0x90   :  { %v117_v60 = vpop.permute.xlu1 %116  ;;  %v112_v61 = vpop.permute.xlu0 %111 }
  0x91   :  { %v128_v62 = vmul.f32 %v123_v52, %v117_v60  ;;  %v127_v63 = vmul.f32 %v123_v52, %v112_v61 }
  0x93   :  { %v132_v8 = vadd.f32 %v128_v62, %v94_v4  ;;  %v131_v9 = vadd.f32 %v127_v63, %v93_v5  ;;  %v1101_v4 = vld [vmem:[%s1759_s6 + $0x50] sm:$0xff]  ;;  %v1102_v5 = vld [vmem:[%s1759_s6 + $0x58] sm:$0xff] }
  0x94   :  { %v145_v2 = vpop.permute.xlu1 %144  ;;  %v140_v3 = vpop.permute.xlu0 %139 }
  0x95   :  { %v158_v6 = vadd.f32 %v145_v2, %v130_v0  ;;  %v157_v7 = vadd.f32 %v140_v3, %v129_v1  ;;  %v1100_v3 = vld [vmem:[%s1759_s6 + $0x48] sm:$0xff] }
  0x97   :  { %1332 = vtanh.f32 %v158_v6  ;;  %v1399_v6 = vmov 0.0|0.0  }
  0x98   :  { %1334 = vtanh.f32 %v157_v7  ;;  %v155_v10 = vpop.permute.xlu1 %154  ;;  %v150_v11 = vpop.permute.xlu0 %149  ;;  %v1401_v7 = vmov 0.0  }
  0x99   :  { %v160_v12 = vadd.f32 %v155_v10, %v132_v8  ;;  %v159_v13 = vadd.f32 %v150_v11, %v131_v9 }
  0x9b   :  { %1336 = vtanh.f32 %v160_v12 }
  0x9c   :  { %1338 = vtanh.f32 %v159_v13  ;;  %v181_v24 = vpop.permute.xlu1 %180  ;;  %v176_v25 = vpop.permute.xlu0 %175 }
  0xa0   :  { %v191_v30 = vpop.permute.xlu1 %190  ;;  %v186_v32 = vpop.permute.xlu0 %185 }
  0xa1   :  { %v1333_v14 = vpop.eup %1332 }
  0xa2   :  { %v1335_v15 = vpop.eup %1334 }
  0xa3   :  { %v1272_v16 = vpack.c.bf16 %v1333_v14, %v1335_v15 }
  0xa4   :  { %v313_v47 = vpop.permute.xlu1 %312  ;;  %v308_v50 = vpop.permute.xlu0 %307 }
  0xa5   :  { %v1337_v17 = vpop.eup %1336  ;;  %1273 = vmatprep.subr.bf16.mxu0 %v1272_v16 }
  0xa6   :  { %v1339_v18 = vpop.eup %1338  ;;  %1275 = vmatpush3.bf16.msra.mxu0 %v1272_v16 }
  0xa7   :  { %v1276_v19 = vpack.c.bf16 %v1337_v17, %v1339_v18 }
  0xa8   :  { %v323_v55 = vpop.permute.xlu1 %322  ;;  %v318_v57 = vpop.permute.xlu0 %317 }
  0xa9   :  { %1277 = vmatprep.subr.bf16.mxu0 %v1276_v19 }
  0xaa   :  { %1279 = vmatpush3.bf16.msra.mxu0 %v1276_v19 }
  0xac   :  { %v444_v8 = vpop.permute.xlu1 %443  ;;  %v439_v9 = vpop.permute.xlu0 %438 }
  0xad   :  { %1189 = vmatmul.mubr.msk.f32.vlgmr.msra.gmra.mrb[0].mxu0 %vm193_vm0, %v166_v20 }
  0xae   :  { %1191 = vmatprep.mubr.msk.f32.mxu0 %vm193_vm0, %v167_v21 }
  0xb0   :  { %v454_v14 = vpop.permute.xlu1 %453  ;;  %v449_v17 = vpop.permute.xlu0 %448 }
  0xb1   :  { %1192 = vmatmul.mubr.msk.f32.gmra.mrb[2].mxu0 %vm193_vm0, %v168_v22  ;;  %v553_v22 = vld [vmem:[%s1761_s8] sm:$0x3] }
  0xb2   :  { %1216 = vmatprep.mubr.msk.f32.mxu0 %vm193_vm0, %v1099_v46 }
 0x180   :  { %v1190_v26 = vpop.f32.mrb[0].mxu0 }
 0x181   :  { %v278_v27 = vadd.f32 %v1190_v26, %v181_v24  ;;  %v272_v28 = vpop.f32.mrb[1].mxu0  ;;  %v558_v24 = vpop.permute.xlu0 %557 }
 0x182   :  { %v273_v29 = vadd.f32 %v272_v28, %v176_v25  ;;  %v1111_v25 = vld [vmem:[%s1755_s2] ss:$0 sm:$0xff] }
 0x183   :  { %1340 = vtanh.f32 %v278_v27  ;;  %v566_v26 = vmul.f32 %v1111_v25, %v558_v24 }
 0x184   :  { %1342 = vtanh.f32 %v273_v29  ;;  %v1193_v31 = vpop.f32.mrb[2].mxu0 }
 0x185   :  { %v288_v33 = vadd.f32 %v1193_v31, %v191_v30  ;;  %v282_v34 = vpop.f32.mrb[3].mxu0  ;;  %v644_v30 = vpop.permute.xlu1 %643 }
 0x186   :  { %v283_v35 = vadd.f32 %v282_v34, %v186_v32  ;;  %v1402_v32 = vmov 1966171168  }
 0x187   :  { %1344 = vtanh.f32 %v288_v33  ;;  %v653_v33 = vunpack.c.l.s4 %v1402_v32 }
 0x188   :  { %1346 = vtanh.f32 %v283_v35 }
 0x189   :  { %v654_v34 = vunpack.c.0.s8 %v653_v33  ;;  %v681_v35 = vpop.permute.xlu1 %680 }
 0x18d   :  { %v1341_v36 = vpop.eup %1340 }
 0x18e   :  { %v1343_v37 = vpop.eup %1342 }
 0x18f   :  { %v1280_v38 = vpack.c.bf16 %v1341_v36, %v1343_v37  ;;  %v676_v36 = vpop.permute.xlu0 %675  ;;  %v657_v37 = vsub.s32 %v654_v34, %v1624_v45  ;;  %v732_v45 = vld [vmem:[%s1766_s13 + $0x8] sm:$0xff] }
 0x191   :  { %v1345_v39 = vpop.eup %1344  ;;  %1281 = vmatprep.subr.bf16.mxu1 %v1280_v38 }
 0x192   :  { %v1347_v40 = vpop.eup %1346  ;;  %1283 = vmatpush3.bf16.msra.mxu1 %v1280_v38  ;;  %v715_v38 = vpop.permute.xlu1 %714 }
 0x193   :  { %v1284_v41 = vpack.c.bf16 %v1345_v39, %v1347_v40  ;;  %v710_v39 = vpop.permute.xlu0 %709 }
 0x195   :  { %1285 = vmatprep.subr.bf16.mxu1 %v1284_v41 }
 0x196   :  { %1287 = vmatpush3.bf16.msra.mxu1 %v1284_v41 }
 0x197   :  { %1296 = vmatprep.subr.bf16.mxu1 %v1399_v6  ;;  %v686_v46 = vpop.permute.xlu0 %685 }
 0x199   :  { %1203 = vmatmul.mubr.msk.f32.vlgmr.msra.gmra.mrb[0].mxu1 %vm193_vm0, %v1088_v42 }
 0x19a   :  { %1205 = vmatprep.mubr.msk.f32.mxu1 %vm193_vm0, %v1089_v43 }
 0x19d   :  { %1206 = vmatmul.mubr.msk.f32.gmra.mrb[2].mxu1 %vm193_vm0, %v1090_v44  ;;  %v691_v44 = vpop.permute.xlu1 %690 }
 0x19e   :  { %1230 = vmatprep.mubr.msk.f32.mxu1 %vm1400_vm1, %v1401_v7 }
 0x26c   :  { %v1204_v51 = vpop.f32.mrb[0].mxu1 }
 0x26d   :  { %v409_v52 = vadd.f32 %v1204_v51, %v313_v47  ;;  %v403_v53 = vpop.f32.mrb[1].mxu1 }
 0x26e   :  { %v404_v54 = vadd.f32 %v403_v53, %v308_v50 }
 0x26f   :  { %1348 = vtanh.f32 %v409_v52 }
 0x270   :  { %1350 = vtanh.f32 %v404_v54  ;;  %v1207_v56 = vpop.f32.mrb[2].mxu1 }
 0x271   :  { %v419_v58 = vadd.f32 %v1207_v56, %v323_v55  ;;  %v413_v59 = vpop.f32.mrb[3].mxu1  ;;  %v725_v56 = vpop.permute.xlu1 %724 }
 0x272   :  { %v414_v60 = vadd.f32 %v413_v59, %v318_v57  ;;  %v720_v57 = vpop.permute.xlu0 %719 }
 0x273   :  { %1352 = vtanh.f32 %v419_v58 }
 0x274   :  { %1354 = vtanh.f32 %v414_v60 }
 0x279   :  { %v1349_v61 = vpop.eup %1348 }
 0x27a   :  { %v1351_v62 = vpop.eup %1350 }
 0x27b   :  { %v1288_v63 = vpack.c.bf16 %v1349_v61, %v1351_v62 }
 0x27d   :  { %v1353_v0 = vpop.eup %1352  ;;  %1289 = vmatprep.subr.bf16.mxu0 %v1288_v63 }
 0x27e   :  { %v1355_v1 = vpop.eup %1354  ;;  %1291 = vmatpush3.bf16.msra.mxu0 %v1288_v63  ;;  %v734_v63 = vld [vmem:[%s1766_s13 + $0x18] sm:$0xff] }
 0x27f   :  { %v1292_v2 = vpack.c.bf16 %v1353_v0, %v1355_v1  ;;  %v1117_v0 = vld [vmem:[%s1766_s13 + $0x20] sm:$0xff]  ;;  %v747_v1 = vpop.permute.xlu1 %746 }
 0x281   :  { %1293 = vmatprep.subr.bf16.mxu0 %v1292_v2 }
 0x282   :  { %1295 = vmatpush3.bf16.msra.mxu0 %v1292_v2  ;;  %v742_v2 = vpop.permute.xlu0 %741 }
 0x285   :  { %1217 = vmatmul.mubr.msk.f32.vlgmr.msra.gmra.mrb[4].mxu0 %vm193_vm0, %v1100_v3 }
 0x286   :  { %1219 = vmatprep.mubr.msk.f32.mxu0 %vm193_vm0, %v1101_v4 }
 0x289   :  { %1220 = vmatmul.mubr.msk.f32.gmra.mrb[6].mxu0 %vm193_vm0, %v1102_v5 }
 0x28a   :  { %1241 = vmatprep.mubr.msk.f32.mxu0 %vm193_vm0, %v731_v23 }
 0x358   :  { %v1218_v10 = vpop.f32.mrb[4].mxu0 }
 0x359   :  { %v540_v11 = vadd.f32 %v1218_v10, %v444_v8  ;;  %v534_v12 = vpop.f32.mrb[5].mxu0 }
 0x35a   :  { %v535_v13 = vadd.f32 %v534_v12, %v439_v9  ;;  %v757_v9 = vpop.permute.xlu1 %756 }
 0x35c   :  { %v1297_v15 = vpack.c.bf16 %v540_v11, %v535_v13  ;;  %v1221_v16 = vpop.f32.mrb[6].mxu0  ;;  %v752_v11 = vpop.permute.xlu0 %751 }
 0x35d   :  { %v550_v18 = vadd.f32 %v1221_v16, %v454_v14  ;;  %v544_v19 = vpop.f32.mrb[7].mxu0 }
 0x35e   :  { %v545_v20 = vadd.f32 %v544_v19, %v449_v17  ;;  %1298 = vmatpush3.bf16.msra.mxu1 %v1297_v15  ;;  %v878_v23 = vpop.permute.xlu1 %877 }
 0x35f   :  { %1299 = vmatprep.subr.bf16.mxu1 %v1399_v6 }
 0x360   :  { %v1300_v21 = vpack.c.bf16 %v550_v18, %v545_v20  ;;  %v1118_v20 = vld [vmem:[%s1766_s13 + $0x28] sm:$0xff]  ;;  %v873_v24 = vpop.permute.xlu0 %872 }
 0x362   :  { %1301 = vmatpush3.bf16.msra.mxu1 %v1300_v21  ;;  %v1119_v21 = vld [vmem:[%s1766_s13 + $0x30] sm:$0xff] }
 0x365   :  { %1231 = vmatmul.mubr.msk.f32.vlgmr.msra.gmra.mrb[4].mxu1 %vm193_vm0, %v553_v22  ;;  %v1120_v22 = vld [vmem:[%s1766_s13 + $0x38] sm:$0xff] }
 0x366   :  { %1255 = vmatprep.mubr.msk.f32.mxu1 %vm193_vm0, %v1117_v0 }
 0x438   :  { %v636_v27 = vpop.f32.mrb[4].mxu1 }
 0x439   :  { %v637_v28 = vadd.f32 %v636_v27, %v566_v26  ;;  %v1232_v29 = vpop.f32.mrb[5].mxu1 }
 0x43a   :  { %v888_v29 = vpop.permute.xlu1 %887 }
 0x43b   :  { %v646_v31 = vadd.f32 %v644_v30, %v637_v28 }
 0x43d   :  { %1356 = vtanh.f32 %v646_v31  ;;  %v883_v31 = vpop.permute.xlu0 %882 }
 0x447   :  { %v1357_v40 = vpop.eup %1356 }
 0x448   :  { %v650_v41 = vsel %vm649_vm2, %v1357_v40, 0.0  ;;  %v658_v42 = vrot.slane %v1357_v40, %v657_v37 }
 0x44a   :  { %v659_v43 = vcombine.high %v658_v42, %v658_v42  ;;  %v993_v42 = vstv %s1769_s16 }
 0x44c   :  { %v666_v47 = vrot.slane %v659_v43, %v657_v37 }
 0x44e   :  { %v668_v50 = vsel %vm648_vm3, %v666_v47, %v650_v41  ;;  %v991_v41 = vld [vmem:[%s1768_s15] sm:$0x1] }
 0x44f   :  { %v697_v51 = vrot.slane %v668_v50, %v122_v48  ;;  %v733_v48 = vld [vmem:[%s1766_s13 + $0x10] sm:$0xff] }
 0x451   :  { %v699_v52 = vmul.f32 %v697_v51, %v676_v36  ;;  %v700_v53 = vmul.f32 %v697_v51, %v681_v35  ;;  %v701_v54 = vmul.f32 %v697_v51, %v686_v46  ;;  %v702_v55 = vmul.f32 %v697_v51, %v691_v44 }
 0x453   :  { %v727_v58 = vadd.f32 %v710_v39, %v699_v52  ;;  %v728_v59 = vadd.f32 %v715_v38, %v700_v53  ;;  %v729_v60 = vadd.f32 %v720_v57, %v701_v54  ;;  %v730_v61 = vadd.f32 %v725_v56, %v702_v55 }
 0x455   :  { %v1302_v62 = vpack.c.bf16 %v728_v59, %v727_v58  ;;  %v1306_v49 = vpack.c.bf16 %v730_v61, %v729_v60 }
 0x457   :  { %1303 = vmatprep.subr.bf16.mxu0 %v1302_v62 }
 0x458   :  { %1305 = vmatpush3.bf16.msra.mxu0 %v1302_v62 }
 0x459   :  { %1307 = vmatprep.subr.bf16.mxu0 %v1306_v49 }
 0x45c   :  { %1309 = vmatpush3.bf16.msra.mxu0 %v1306_v49 }
 0x45d   :  { %1318 = vmatprep.subr.bf16.mxu0 %v1399_v6 }
 0x45f   :  { %1242 = vmatmul.mubr.msk.f32.vlgmr.msra.gmra.mrb[8].mxu0 %vm193_vm0, %v732_v45 }
 0x460   :  { %1244 = vmatprep.mubr.msk.f32.mxu0 %vm193_vm0, %v733_v48 }
 0x463   :  { %1245 = vmatmul.mubr.msk.f32.gmra.mrb[10].mxu0 %vm193_vm0, %v734_v63 }
 0x464   :  { %1269 = vmatprep.mubr.msk.f32.mxu0 %vm1400_vm1, %v1401_v7 }
 0x532   :  { %v1243_v3 = vpop.f32.mrb[8].mxu0 }
 0x533   :  { %v843_v4 = vadd.f32 %v1243_v3, %v747_v1  ;;  %v837_v5 = vpop.f32.mrb[9].mxu0 }
 0x534   :  { %v838_v8 = vadd.f32 %v837_v5, %v742_v2 }
 0x535   :  { %1358 = vtanh.f32 %v843_v4 }
 0x536   :  { %1360 = vtanh.f32 %v838_v8  ;;  %v1246_v10 = vpop.f32.mrb[10].mxu0 }
 0x537   :  { %v853_v12 = vadd.f32 %v1246_v10, %v757_v9  ;;  %v847_v13 = vpop.f32.mrb[11].mxu0 }
 0x538   :  { %v848_v7 = vadd.f32 %v847_v13, %v752_v11 }
 0x539   :  { %1362 = vtanh.f32 %v853_v12 }
 0x53a   :  { %1364 = vtanh.f32 %v848_v7 }
 0x53f   :  { %v1359_v14 = vpop.eup %1358 }
 0x540   :  { %v1361_v15 = vpop.eup %1360 }
 0x541   :  { %v1310_v16 = vpack.c.bf16 %v1359_v14, %v1361_v15 }
 0x543   :  { %v1363_v17 = vpop.eup %1362  ;;  %1311 = vmatprep.subr.bf16.mxu1 %v1310_v16 }
 0x544   :  { %v1365_v18 = vpop.eup %1364  ;;  %1313 = vmatpush3.bf16.msra.mxu1 %v1310_v16 }
 0x545   :  { %v1314_v19 = vpack.c.bf16 %v1363_v17, %v1365_v18 }
 0x547   :  { %1315 = vmatprep.subr.bf16.mxu1 %v1314_v19 }
 0x548   :  { %1317 = vmatpush3.bf16.msra.mxu1 %v1314_v19 }
 0x54b   :  { %1256 = vmatmul.mubr.msk.f32.vlgmr.msra.gmra.mrb[6].mxu1 %vm193_vm0, %v1118_v20 }
 0x54c   :  { %1258 = vmatprep.mubr.msk.f32.mxu1 %vm193_vm0, %v1119_v21 }
 0x54f   :  { %1259 = vmatmul.mubr.msk.f32.gmra.mrb[8].mxu1 %vm193_vm0, %v1120_v22 }
 0x61e   :  { %v1257_v25 = vpop.f32.mrb[6].mxu1 }
 0x61f   :  { %v974_v26 = vadd.f32 %v1257_v25, %v878_v23  ;;  %v968_v27 = vpop.f32.mrb[7].mxu1 }
 0x620   :  { %v969_v28 = vadd.f32 %v968_v27, %v873_v24 }
 0x621   :  { %1366 = vtanh.f32 %v974_v26 }
 0x622   :  { %1368 = vtanh.f32 %v969_v28  ;;  %v1260_v30 = vpop.f32.mrb[8].mxu1 }
 0x623   :  { %v984_v32 = vadd.f32 %v1260_v30, %v888_v29  ;;  %v978_v33 = vpop.f32.mrb[9].mxu1 }
 0x624   :  { %v979_v34 = vadd.f32 %v978_v33, %v883_v31 }
 0x625   :  { %1370 = vtanh.f32 %v984_v32 }
 0x626   :  { %1372 = vtanh.f32 %v979_v34 }
 0x62b   :  { %v1367_v35 = vpop.eup %1366 }
 0x62c   :  { %v1369_v36 = vpop.eup %1368 }
 0x62d   :  { %v1319_v37 = vpack.c.bf16 %v1367_v35, %v1369_v36 }
 0x62f   :  { %v1371_v38 = vpop.eup %1370  ;;  %1320 = vmatpush3.bf16.msra.mxu0 %v1319_v37 }
 0x630   :  { %v1373_v39 = vpop.eup %1372  ;;  %1321 = vmatprep.subr.bf16.mxu0 %v1399_v6 }
 0x631   :  { %v1322_v40 = vpack.c.bf16 %v1371_v38, %v1373_v39 }
 0x633   :  { %1323 = vmatpush3.bf16.msra.mxu0 %v1322_v40 }
 0x636   :  { %1270 = vmatmul.mubr.msk.f32.vlgmr.msra.gmra.mrb[12].mxu0 %vm193_vm0, %v991_v41 }
 0x709   :  { %v1063_v43 = vpop.f32.mrb[12].mxu0 }
 0x70a   :  { %v1064_v44 = vadd.f32 %v1063_v43, %v993_v42  ;;  %v1271_v46 = vpop.f32.mrb[13].mxu0 }
 0x70c   :  { %1067 = vst [vmem:[#allocation3] sm:$0x1] %v1064_v44 }
 0x70d   :  { %1385 = shalt.err (!%p1382_p4)
}
 0x70e   :  { %s1386_s1 = scalar_lea.hbm %s1770_s17, 16 }
 0x70f   :  { %p1387_p5 = scmp.ne.s32.totalorder %s1770_s17, %s1386_s1  ;;  %p1390_p6 = scmp.lt.u32.totalorder %s1386_s1, %s1770_s17 }
 0x711   :  { %p1392_p7 = pnand %p1390_p6, %p1387_p5 }
 0x713   :  { %1395 = shalt.err (!%p1392_p7)
}
 0x714   :  { %1077 = dma.vmem_to_hbm [thread:$0]  %s1075_s18, 16, %s1770_s17, [#allocation4]  }
 0x715   :  { %1396 = dma.done.wait [#allocation4], 16  }
 0x716   :  { %1397 = vsyncadd [#allocation4], 4294967280 }
 0x717   :  { %1081 = vsyncpa [#allocation4], 1 }

</bundles_post_ra>
